<compile_context>
chip_gen: v5e
topology: v5e:2x2
jax: 0.10.0
libtpu: 0.0.40
codegen_flags: <defaults>
</compile_context>

<pallas_src>
import functools

import jax
import jax.numpy as jnp
from jax import lax
from jax.experimental import pallas as pl
from jax.experimental.pallas import tpu as pltpu


def _mlp_kernel(x_ref, w1_ref, b1_ref, w2_ref, b2_ref, w3_ref, b3_ref, o_ref):
    # x tile: (TB, dim_in) f32 straight from HBM; weights bf16 PyTorch layout:
    # w1 (128, dim_in), w2 (32, 128), w3 (2, 32); biases f32 column vectors.
    x = x_ref[...].astype(jnp.bfloat16)                      # (TB, dim_in)

    # Contract dim_in of w1 with dim_in of x -> feature-major (128, TB).
    h1 = lax.dot_general(
        w1_ref[...], x,
        dimension_numbers=(((1,), (1,)), ((), ())),
        preferred_element_type=jnp.float32) + b1_ref[...]
    h1 = jnp.maximum(h1, 0.0)                                # (128, TB) f32

    h2 = jnp.dot(w2_ref[...], h1.astype(jnp.bfloat16),
                 preferred_element_type=jnp.float32) + b2_ref[...]
    h2 = jnp.maximum(h2, 0.0)                                # (32, TB) f32

    out = jnp.dot(w3_ref[...], h2.astype(jnp.bfloat16),
                  preferred_element_type=jnp.float32) + b3_ref[...]   # (2, TB)
    o_ref[...] = out.astype(o_ref.dtype)                     # lane-dense store


def prepare_params(params):
    """One-time layout/dtype prep of the PyTorch-layout params for the kernel.

    Weights stay in PyTorch (out, in) layout (feature-major needs no transpose),
    cast to bf16 for the MXU; biases become f32 column vectors (out, 1).
    """
    return {
        "w1": params["w1"].astype(jnp.bfloat16),           # (128, dim_in)
        "w2": params["w2"].astype(jnp.bfloat16),           # (32, 128)
        "w3": params["w3"].astype(jnp.bfloat16),           # (2, 32)
        "b1": params["b1"].reshape(-1, 1).astype(jnp.float32),
        "b2": params["b2"].reshape(-1, 1).astype(jnp.float32),
        "b3": params["b3"].reshape(-1, 1).astype(jnp.float32),
    }


@functools.partial(jax.jit, static_argnames=("dim_in", "tb_max"))
def mlp_o_forward(x, prepared, dim_in, tb_max=4096):
    """Pallas implementation of MLP_O.forward.

    x: any shape whose elements flatten to (-1, dim_in)
    prepared: output of prepare_params().
    """
    x2d = x.reshape(-1, dim_in)
    B = x2d.shape[0]

    # Batch tile: multiple of 128 lanes, big enough to amortize the ~0.35us
    # per-grid-step cost, but capped so large batches still give >=4 grid steps
    # (keeps both v7x TensorCores busy and the DMA pipeline full).
    tb_max = max(128, (tb_max // 128) * 128)                 # enforce 128-multiple
    tb_target = -(-B // 4)                                   # ceil(B / 4)
    TB = min(tb_max, max(128, ((tb_target + 127) // 128) * 128))
    B_pad = ((B + TB - 1) // TB) * TB

    if B_pad != B:
        # Padded rows produce relu(bias) garbage columns that are sliced off
        # below; under jit this pad fuses with the kernel's input pass.
        x2d = jnp.pad(x2d, ((0, B_pad - B), (0, 0)))

    out_t = pl.pallas_call(
        _mlp_kernel,
        out_shape=jax.ShapeDtypeStruct((2, B_pad), jnp.float32),
        grid=(B_pad // TB,),
        in_specs=[
            pl.BlockSpec((TB, dim_in), lambda i: (i, 0)),   # x tile (pipelined)
            pl.BlockSpec((128, dim_in), lambda i: (0, 0)),  # w1 (VMEM-resident)
            pl.BlockSpec((128, 1), lambda i: (0, 0)),       # b1
            pl.BlockSpec((32, 128), lambda i: (0, 0)),      # w2
            pl.BlockSpec((32, 1), lambda i: (0, 0)),        # b2
            pl.BlockSpec((2, 32), lambda i: (0, 0)),        # w3
            pl.BlockSpec((2, 1), lambda i: (0, 0)),         # b3
        ],
        out_specs=pl.BlockSpec((2, TB), lambda i: (0, i)),
        compiler_params=pltpu.CompilerParams(
            dimension_semantics=("parallel",),              # 2nd TC on v7x
            vmem_limit_bytes=32 * 1024 * 1024,              # headroom on v5e/v7x
        ),
    )(x2d, prepared["w1"], prepared["b1"], prepared["w2"], prepared["b2"],
      prepared["w3"], prepared["b3"])

    return out_t[:, :B].T                                   # (B, 2)


def init_params(key, input_size, dim_in):
    """Deterministic parameter init mirroring MLP_O.__init__ shapes (PyTorch layout)."""
    k_inp, k1, k2, k3, kb1, kb2, kb3 = jax.random.split(key, 7)

    def linear_init(kw, kb, fan_in, fan_out):
        # PyTorch nn.Linear default: U(-1/sqrt(fan_in), 1/sqrt(fan_in))
        bound = 1.0 / jnp.sqrt(fan_in)
        w = jax.random.uniform(kw, (fan_out, fan_in), jnp.float32, -bound, bound)
        b = jax.random.uniform(kb, (fan_out,), jnp.float32, -bound, bound)
        return w, b

    w1, b1 = linear_init(k1, kb1, dim_in, 128)
    w2, b2 = linear_init(k2, kb2, 128, 32)
    w3, b3 = linear_init(k3, kb3, 32, 2)

    # self.input parameter (normal * 0.001); unused in forward but part of the module.
    inp_param = jax.random.normal(k_inp, tuple(input_size), jnp.float32) * 0.001

    return {
        "input": inp_param,
        "w1": w1, "b1": b1,
        "w2": w2, "b2": b2,
        "w3": w3, "b3": b3,
    }


def reference_forward(x, params, dim_in):
    """Pure-JAX f32 reference for correctness check (PyTorch-layout params)."""
    x2d = x.reshape(-1, dim_in).astype(jnp.float32)
    h1 = jnp.maximum(x2d @ params["w1"].T + params["b1"], 0.0)
    h2 = jnp.maximum(h1 @ params["w2"].T + params["b2"], 0.0)
    return h2 @ params["w3"].T + params["b3"]


if __name__ == "__main__":
    key = jax.random.PRNGKey(0)
    k_params, k_x = jax.random.split(key)

    dim_in = 32
    input_size = (4, 8)          # shape of the (unused-in-forward) self.input parameter
    params = init_params(k_params, input_size, dim_in)
    prepared = prepare_params(params)     # one-time layout/dtype prep

    # Example input: (batch=8, 4, 8) -> view(-1, 32) gives (8, 32)
    x = jax.random.normal(k_x, (8, 4, 8), jnp.float32)

    out = mlp_o_forward(x, prepared, dim_in)
    out = jax.block_until_ready(out)

    ref = reference_forward(x, params, dim_in)
    assert out.shape == (8, 2), out.shape
    # bf16 matmul operands (f32 accumulation) -> loosened tolerance vs f32 reference.
    assert jnp.allclose(out, ref, atol=5e-2, rtol=5e-2), "mismatch vs reference"

    print("KERNEL_OK")
</pallas_src>

<mosaic_0001>
module attributes {stable_mosaic.version = 11 : i64} {
  func.func @_mlp_kernel(%arg0: i32, %arg1: memref<128x32xf32, #tpu.memory_space<vmem>>, %arg2: memref<128x32xbf16, #tpu.memory_space<vmem>>, %arg3: memref<128x1xf32, #tpu.memory_space<vmem>>, %arg4: memref<32x128xbf16, #tpu.memory_space<vmem>>, %arg5: memref<32x1xf32, #tpu.memory_space<vmem>>, %arg6: memref<2x32xbf16, #tpu.memory_space<vmem>>, %arg7: memref<2x1xf32, #tpu.memory_space<vmem>>, %arg8: memref<2x128xf32, #tpu.memory_space<vmem>>) attributes {dimension_semantics = [#tpu.dimension_semantics<parallel>], iteration_bounds = array<i64: 1>, scalar_prefetch = 0 : i64, scratch_operands = 0 : i64, tpu.core_type = #tpu.core_type<tc>, window_params = [{transform_indices = @transform_0, window_bounds = array<i64: 128, 32>}, {pipeline_mode = #tpu.pipeline_mode<synchronous>, transform_indices = @transform_1, window_bounds = array<i64: 128, 32>}, {pipeline_mode = #tpu.pipeline_mode<synchronous>, transform_indices = @transform_2, window_bounds = array<i64: 128, 1>}, {pipeline_mode = #tpu.pipeline_mode<synchronous>, transform_indices = @transform_3, window_bounds = array<i64: 32, 128>}, {pipeline_mode = #tpu.pipeline_mode<synchronous>, transform_indices = @transform_4, window_bounds = array<i64: 32, 1>}, {pipeline_mode = #tpu.pipeline_mode<synchronous>, transform_indices = @transform_5, window_bounds = array<i64: 2, 32>}, {pipeline_mode = #tpu.pipeline_mode<synchronous>, transform_indices = @transform_6, window_bounds = array<i64: 2, 1>}, {transform_indices = @transform_7, window_bounds = array<i64: 2, 128>}]} {
    %c0 = arith.constant 0 : index
    %c0_0 = arith.constant 0 : index
    %0 = vector.load %arg1[%c0, %c0_0] : memref<128x32xf32, #tpu.memory_space<vmem>>, vector<128x32xf32>
    %1 = arith.truncf %0 : vector<128x32xf32> to vector<128x32xbf16>
    %c0_1 = arith.constant 0 : index
    %c0_2 = arith.constant 0 : index
    %2 = vector.load %arg2[%c0_1, %c0_2] : memref<128x32xbf16, #tpu.memory_space<vmem>>, vector<128x32xbf16>
    %cst = arith.constant dense<0.000000e+00> : vector<128x128xf32>
    %3 = tpu.matmul %2, %1, %cst {dimension_numbers = #tpu.dot_dimension_numbers<[1], [1], [0], [0], [0, 0, 1, 0], [], []>} : vector<128x32xbf16>, vector<128x32xbf16>, vector<128x128xf32> -> vector<128x128xf32>
    %c0_3 = arith.constant 0 : index
    %c0_4 = arith.constant 0 : index
    %4 = vector.load %arg3[%c0_3, %c0_4] : memref<128x1xf32, #tpu.memory_space<vmem>>, vector<128x1xf32>
    %5 = vector.broadcast %4 : vector<128x1xf32> to vector<128x128xf32>
    %6 = arith.addf %3, %5 : vector<128x128xf32>
    %cst_5 = arith.constant 0.000000e+00 : f32
    %7 = vector.broadcast %cst_5 : f32 to vector<128x128xf32>
    %8 = arith.maximumf %6, %7 : vector<128x128xf32>
    %c0_6 = arith.constant 0 : index
    %c0_7 = arith.constant 0 : index
    %9 = vector.load %arg4[%c0_6, %c0_7] : memref<32x128xbf16, #tpu.memory_space<vmem>>, vector<32x128xbf16>
    %10 = arith.truncf %8 : vector<128x128xf32> to vector<128x128xbf16>
    %cst_8 = arith.constant dense<0.000000e+00> : vector<32x128xf32>
    %11 = tpu.matmul %9, %10, %cst_8 {dimension_numbers = #tpu.dot_dimension_numbers<[1], [0], [0], [1], [0, 0, 1, 1], [], []>} : vector<32x128xbf16>, vector<128x128xbf16>, vector<32x128xf32> -> vector<32x128xf32>
    %c0_9 = arith.constant 0 : index
    %c0_10 = arith.constant 0 : index
    %12 = vector.load %arg5[%c0_9, %c0_10] : memref<32x1xf32, #tpu.memory_space<vmem>>, vector<32x1xf32>
    %13 = vector.broadcast %12 : vector<32x1xf32> to vector<32x128xf32>
    %14 = arith.addf %11, %13 : vector<32x128xf32>
    %cst_11 = arith.constant 0.000000e+00 : f32
    %15 = vector.broadcast %cst_11 : f32 to vector<32x128xf32>
    %16 = arith.maximumf %14, %15 : vector<32x128xf32>
    %c0_12 = arith.constant 0 : index
    %c0_13 = arith.constant 0 : index
    %17 = vector.load %arg6[%c0_12, %c0_13] : memref<2x32xbf16, #tpu.memory_space<vmem>>, vector<2x32xbf16>
    %18 = arith.truncf %16 : vector<32x128xf32> to vector<32x128xbf16>
    %cst_14 = arith.constant dense<0.000000e+00> : vector<2x128xf32>
    %19 = tpu.matmul %17, %18, %cst_14 {dimension_numbers = #tpu.dot_dimension_numbers<[1], [0], [0], [1], [0, 0, 1, 1], [], []>} : vector<2x32xbf16>, vector<32x128xbf16>, vector<2x128xf32> -> vector<2x128xf32>
    %c0_15 = arith.constant 0 : index
    %c0_16 = arith.constant 0 : index
    %20 = vector.load %arg7[%c0_15, %c0_16] : memref<2x1xf32, #tpu.memory_space<vmem>>, vector<2x1xf32>
    %21 = vector.broadcast %20 : vector<2x1xf32> to vector<2x128xf32>
    %22 = arith.addf %19, %21 : vector<2x128xf32>
    %c0_17 = arith.constant 0 : index
    %c0_18 = arith.constant 0 : index
    %23 = vector.load %arg8[%c0_17, %c0_18] : memref<2x128xf32, #tpu.memory_space<vmem>>, vector<2x128xf32>
    tpu.vector_store %arg8[%c0_17, %c0_18], %22 {strides = array<i32>} : memref<2x128xf32, #tpu.memory_space<vmem>>, vector<2x128xf32>,
    return
  }
  func.func @transform_0(%arg0: i32) -> (i32, i32) {
    %c0_i32 = arith.constant 0 : i32
    %c0_i32_0 = arith.constant 0 : i32
    return %arg0, %c0_i32 : i32, i32
  }
  func.func @transform_1(%arg0: i32) -> (i32, i32) {
    %c0_i32 = arith.constant 0 : i32
    %c0_i32_0 = arith.constant 0 : i32
    %c0_i32_1 = arith.constant 0 : i32
    return %c0_i32, %c0_i32_0 : i32, i32
  }
  func.func @transform_2(%arg0: i32) -> (i32, i32) {
    %c0_i32 = arith.constant 0 : i32
    %c0_i32_0 = arith.constant 0 : i32
    %c0_i32_1 = arith.constant 0 : i32
    return %c0_i32, %c0_i32_0 : i32, i32
  }
  func.func @transform_3(%arg0: i32) -> (i32, i32) {
    %c0_i32 = arith.constant 0 : i32
    %c0_i32_0 = arith.constant 0 : i32
    %c0_i32_1 = arith.constant 0 : i32
    return %c0_i32, %c0_i32_0 : i32, i32
  }
  func.func @transform_4(%arg0: i32) -> (i32, i32) {
    %c0_i32 = arith.constant 0 : i32
    %c0_i32_0 = arith.constant 0 : i32
    %c0_i32_1 = arith.constant 0 : i32
    return %c0_i32, %c0_i32_0 : i32, i32
  }
  func.func @transform_5(%arg0: i32) -> (i32, i32) {
    %c0_i32 = arith.constant 0 : i32
    %c0_i32_0 = arith.constant 0 : i32
    %c0_i32_1 = arith.constant 0 : i32
    return %c0_i32, %c0_i32_0 : i32, i32
  }
  func.func @transform_6(%arg0: i32) -> (i32, i32) {
    %c0_i32 = arith.constant 0 : i32
    %c0_i32_0 = arith.constant 0 : i32
    %c0_i32_1 = arith.constant 0 : i32
    return %c0_i32, %c0_i32_0 : i32, i32
  }
  func.func @transform_7(%arg0: i32) -> (i32, i32) {
    %c0_i32 = arith.constant 0 : i32
    %c0_i32_0 = arith.constant 0 : i32
    return %c0_i32, %arg0 : i32, i32
  }
}

</mosaic_0001>

<bundles_post_ra>
// kernel: mlp_o_forward.1
= control target key start
LH: loop header
LB: loop body
LE: loop exit
PB: predicated region body
PF: predicated region fallthrough
CT: control target
= control target key end

     0   :  { %vm203_vm0 = vcmask 261120   ;;  %v497_v20 = vmov 0   ;;  %s702_s0 = inlined_call_operand.vmem [shape: f32[128,32], index: 0, kind: input, shape index: {}]   ;;  %s703_s2 = inlined_call_operand.vmem [shape: f32[128,1], index: 2, kind: input, shape index: {}]   ;;  %s704_s1 = inlined_call_operand.vmem [shape: bf16[128,32], index: 1, kind: input, shape index: {}]   ;;  %s705_s4 = inlined_call_operand.vmem [shape: f32[32,1], index: 4, kind: input, shape index: {}]   ;;  %s706_s6 = inlined_call_operand.vmem [shape: f32[2,1], index: 6, kind: input, shape index: {}]   ;;  %s707_s3 = inlined_call_operand.vmem [shape: bf16[32,128], index: 3, kind: input, shape index: {}]   ;;  %s708_s5 = inlined_call_operand.vmem [shape: bf16[2,32], index: 5, kind: input, shape index: {}]   ;;  %s709_s7 = inlined_call_operand.vmem [shape: f32[2,128], index: 7, kind: output, shape index: {}]  }
   0x1   :  { %v41_v0 = vld [vmem:[%s702_s0 + $0x70] sm:$0xff]  ;;  %v42_v1 = vld [vmem:[%s702_s0 + $0x78] sm:$0xff]  ;;  %v39_v3 = vld [vmem:[%s702_s0 + $0x60] sm:$0xff]  ;;  %494 = vset.pattern.permute.xlu0 %v497_v20  ;;  %495 = vset.pattern.permute.xlu1 %v497_v20 }
   0x2   :  { %v50_v2 = vpack.c.bf16 %v42_v1, %v41_v0  ;;  %v40_v4 = vld [vmem:[%s702_s0 + $0x68] sm:$0xff]  ;;  %v37_v8 = vld [vmem:[%s702_s0 + $0x50] sm:$0xff]  ;;  %v38_v9 = vld [vmem:[%s702_s0 + $0x58] sm:$0xff]  ;;  %496 = vset.pattern.permute.xlu2 %v497_v20 }
   0x3   :  { %v49_v6 = vpack.c.bf16 %v40_v4, %v39_v3  ;;  %v48_v10 = vpack.c.bf16 %v38_v9, %v37_v8  ;;  %v35_v12 = vld [vmem:[%s702_s0 + $0x40] sm:$0xff]  ;;  %v36_v13 = vld [vmem:[%s702_s0 + $0x48] sm:$0xff]  ;;  %v33_v16 = vld [vmem:[%s702_s0 + $0x30] sm:$0xff] }
   0x4   :  { %v250_v5 = vsel %vm203_vm0, %v50_v2, 0  ;;  %v47_v14 = vpack.c.bf16 %v36_v13, %v35_v12  ;;  %v34_v17 = vld [vmem:[%s702_s0 + $0x38] sm:$0xff]  ;;  %v81_v18 = vld [vmem:[%s703_s2 + $0x70] sm:$0xff]  ;;  %v31_v22 = vld [vmem:[%s702_s0 + $0x20] sm:$0xff] }
   0x5   :  { %477 = vmatpush.bf16.xpose.msra.mxu2 %v250_v5  ;;  %478 = vmatpush.bf16.xpose.msra.mxu3 %v250_v5  ;;  %v247_v7 = vsel %vm203_vm0, %v49_v6, 0  ;;  %v244_v11 = vsel %vm203_vm0, %v48_v10, 0  ;;  %v46_v19 = vpack.c.bf16 %v34_v17, %v33_v16  ;;  %v32_v23 = vld [vmem:[%s702_s0 + $0x28] sm:$0xff]  ;;  %v79_v24 = vld [vmem:[%s703_s2 + $0x60] sm:$0xff]  ;;  %v82_v25 = vld [vmem:[%s703_s2 + $0x78] sm:$0xff] }
   0x6   :  { %252 = vmatpush.bf16.xpose.msra.mxu0 %v250_v5  ;;  %v241_v15 = vsel %vm203_vm0, %v47_v14, 0  ;;  %155 = vperm.xlu0 %494, %v81_v18   ;;  %v45_v26 = vpack.c.bf16 %v32_v23, %v31_v22  ;;  %v29_v28 = vld [vmem:[%s702_s0 + $0x10] sm:$0xff]  ;;  %v30_v29 = vld [vmem:[%s702_s0 + $0x18] sm:$0xff]  ;;  %v80_v30 = vld [vmem:[%s703_s2 + $0x68] sm:$0xff] }
   0x7   :  { %v238_v21 = vsel %vm203_vm0, %v46_v19, 0  ;;  %145 = vperm.xlu1 %495, %v79_v24   ;;  %v75_v31 = vld [vmem:[%s703_s2 + $0x40] sm:$0xff]  ;;  %v44_v32 = vpack.c.bf16 %v30_v29, %v29_v28  ;;  %v28_v35 = vld [vmem:[%s702_s0 + $0x8] sm:$0xff]  ;;  %v74_v37 = vld [vmem:[%s703_s2 + $0x38] sm:$0xff] }
   0x8   :  { %v235_v27 = vsel %vm203_vm0, %v45_v26, 0  ;;  %v27_v34 = vld [vmem:[%s702_s0] sm:$0xff]  ;;  %v76_v36 = vld [vmem:[%s703_s2 + $0x48] sm:$0xff]  ;;  %v77_v38 = vld [vmem:[%s703_s2 + $0x50] sm:$0xff] }
   0x9   :  { %v232_v33 = vsel %vm203_vm0, %v44_v32, 0  ;;  %v43_v39 = vpack.c.bf16 %v28_v35, %v27_v34  ;;  %135 = vperm.xlu2 %496, %v77_v38   ;;  %v71_v41 = vld [vmem:[%s703_s2 + $0x20] sm:$0xff]  ;;  %v69_v42 = vld [vmem:[%s703_s2 + $0x10] sm:$0xff]  ;;  %v472_v44 = vld [vmem:[%s704_s1 + $0x28] sm:$0xff] }
   0xa   :  { %v469_v43 = vld [vmem:[%s704_s1 + $0x10] sm:$0xff]  ;;  %v467_v45 = vld [vmem:[%s704_s1] sm:$0xff]  ;;  %v70_v46 = vld [vmem:[%s703_s2 + $0x18] sm:$0xff] }
   0xb   :  { %v229_v40 = vsel %vm203_vm0, %v43_v39, 0  ;;  %v78_v47 = vld [vmem:[%s703_s2 + $0x58] sm:$0xff]  ;;  %v68_v48 = vld [vmem:[%s703_s2 + $0x8] sm:$0xff]  ;;  %v73_v49 = vld [vmem:[%s703_s2 + $0x30] sm:$0xff] }
   0xc   :  { %v331_v50 = vld [vmem:[%s705_s4 + $0x10] sm:$0xff]  ;;  %v329_v51 = vld [vmem:[%s705_s4] sm:$0xff]  ;;  %v470_v52 = vld [vmem:[%s704_s1 + $0x18] sm:$0xff] }
   0xd   :  { %479 = vmatpush.bf16.xpose.msra.mxu2 %v247_v7  ;;  %480 = vmatpush.bf16.xpose.msra.mxu3 %v247_v7  ;;  %v473_v53 = vld [vmem:[%s704_s1 + $0x30] sm:$0xff]  ;;  %v468_v54 = vld [vmem:[%s704_s1 + $0x8] sm:$0xff]  ;;  %v67_v57 = vld [vmem:[%s703_s2] sm:$0xff] }
   0xe   :  { %253 = vmatpush.bf16.xpose.msra.mxu0 %v247_v7  ;;  %160 = vperm.xlu0 %494, %v82_v25   ;;  %v72_v55 = vld [vmem:[%s703_s2 + $0x28] sm:$0xff]  ;;  %v471_v58 = vld [vmem:[%s704_s1 + $0x20] sm:$0xff]  ;;  %v474_v59 = vld [vmem:[%s704_s1 + $0x38] sm:$0xff] }
   0xf   :  { %150 = vperm.xlu1 %495, %v80_v30   ;;  %v330_v56 = vld [vmem:[%s705_s4 + $0x8] sm:$0xff]  ;;  %v332_v60 = vld [vmem:[%s705_s4 + $0x18] sm:$0xff]  ;;  %v391_v61 = vld [vmem:[%s706_s6] sm:$0x3] }
  0x11   :  { %140 = vperm.xlu2 %496, %v78_v47  }
  0x15   :  { %481 = vmatpush.bf16.xpose.msra.mxu2 %v244_v11  ;;  %482 = vmatpush.bf16.xpose.msra.mxu3 %v244_v11 }
  0x16   :  { %254 = vmatpush.bf16.xpose.msra.mxu0 %v244_v11  ;;  %125 = vperm.xlu0 %494, %v75_v31  }
  0x17   :  { %130 = vperm.xlu1 %495, %v76_v36  }
  0x19   :  { %115 = vperm.xlu2 %496, %v73_v49  }
  0x1d   :  { %483 = vmatpush.bf16.xpose.msra.mxu2 %v241_v15  ;;  %484 = vmatpush.bf16.xpose.msra.mxu3 %v241_v15 }
  0x1e   :  { %255 = vmatpush.bf16.xpose.msra.mxu0 %v241_v15  ;;  %120 = vperm.xlu0 %494, %v74_v37  }
  0x1f   :  { %105 = vperm.xlu1 %495, %v71_v41  }
  0x21   :  { %110 = vperm.xlu2 %496, %v72_v55  }
  0x25   :  { %485 = vmatpush.bf16.xpose.msra.mxu2 %v238_v21  ;;  %486 = vmatpush.bf16.xpose.msra.mxu3 %v238_v21 }
  0x26   :  { %256 = vmatpush.bf16.xpose.msra.mxu0 %v238_v21  ;;  %95 = vperm.xlu0 %494, %v69_v42  }
  0x27   :  { %100 = vperm.xlu1 %495, %v70_v46  }
  0x29   :  { %85 = vperm.xlu2 %496, %v67_v57  }
  0x2d   :  { %487 = vmatpush.bf16.xpose.msra.mxu2 %v235_v27  ;;  %488 = vmatpush.bf16.xpose.msra.mxu3 %v235_v27 }
  0x2e   :  { %257 = vmatpush.bf16.xpose.msra.mxu0 %v235_v27  ;;  %90 = vperm.xlu0 %494, %v68_v48  }
  0x2f   :  { %345 = vperm.xlu1 %495, %v331_v50  }
  0x31   :  { %350 = vperm.xlu2 %496, %v332_v60  }
  0x35   :  { %489 = vmatpush.bf16.xpose.msra.mxu2 %v232_v33  ;;  %490 = vmatpush.bf16.xpose.msra.mxu3 %v232_v33 }
  0x36   :  { %258 = vmatpush.bf16.xpose.msra.mxu0 %v232_v33  ;;  %335 = vperm.xlu0 %494, %v329_v51  }
  0x37   :  { %340 = vperm.xlu1 %495, %v330_v56  }
  0x39   :  { %394 = vperm.xlu2 %496, %v391_v61  }
  0x3d   :  { %491 = vmatpush.bf16.xpose.msra.mxu2 %v229_v40  ;;  %492 = vmatpush.bf16.xpose.msra.mxu3 %v229_v40 }
  0x3e   :  { %259 = vmatpush.bf16.xpose.msra.mxu0 %v229_v40 }
  0x44   :  { %452 = vmatmul.msk.bf16.vlgmr.msra.gmra.mxu2 %vm203_vm0, %v469_v43  ;;  %455 = vmatmul.msk.bf16.vlgmr.msra.gmra.mxu3 %vm203_vm0, %v472_v44 }
  0x45   :  { %450 = vmatmul.msk.bf16.vlgmr.msra.gmra.mxu0 %vm203_vm0, %v467_v45 }
  0x54   :  { %453 = vmatmul.msk.bf16.gmra.mxu2 %vm203_vm0, %v470_v52  ;;  %456 = vmatmul.msk.bf16.gmra.mxu3 %vm203_vm0, %v473_v53 }
  0x55   :  { %451 = vmatmul.msk.bf16.gmra.mxu0 %vm203_vm0, %v468_v54 }
  0x63   :  { %v136_v6 = vpop.permute.xlu2 %135 }
  0x64   :  { %454 = vmatmul.msk.bf16.gmra.mxu2 %vm203_vm0, %v471_v58  ;;  %457 = vmatmul.msk.bf16.gmra.mxu3 %vm203_vm0, %v474_v59 }
  0x6b   :  { %v141_v13 = vpop.permute.xlu2 %140 }
  0x73   :  { %v116_v22 = vpop.permute.xlu2 %115 }
  0x78   :  { %v156_v2 = vpop.permute.xlu0 %155 }
  0x79   :  { %v146_v5 = vpop.permute.xlu1 %145 }
  0x7b   :  { %v111_v40 = vpop.permute.xlu2 %110 }
  0x80   :  { %v161_v7 = vpop.permute.xlu0 %160 }
  0x81   :  { %v151_v11 = vpop.permute.xlu1 %150 }
  0x83   :  { %v86_v59 = vpop.permute.xlu2 %85 }
  0x88   :  { %v126_v14 = vpop.permute.xlu0 %125 }
  0x89   :  { %v131_v18 = vpop.permute.xlu1 %130 }
  0x90   :  { %v121_v26 = vpop.permute.xlu0 %120 }
  0x91   :  { %v106_v37 = vpop.permute.xlu1 %105 }
  0x98   :  { %v96_v45 = vpop.permute.xlu0 %95 }
  0x99   :  { %v101_v54 = vpop.permute.xlu1 %100 }
  0xa0   :  { %v91_v60 = vpop.permute.xlu0 %90 }
  0xc2   :  { %v261_v10 = vpop.f32.mrf.mxu0 }
  0xc3   :  { %v262_v61 = vadd.f32 %v261_v10, %v86_v59  ;;  %v346_v10 = vpop.permute.xlu1 %345 }
  0xc7   :  { %v271_v62 = vpop.f32.mrf.mxu2  ;;  %v286_v63 = vpop.f32.mrf.mxu3 }
  0xc8   :  { %v287_v31 = vadd.f32 %v286_v63, %v136_v6  ;;  %v272_v47 = vadd.f32 %v271_v62, %v106_v37  ;;  %v475_v6 = vld [vmem:[%s707_s3] sm:$0xff] }
  0xca   :  { %v263_v16 = vpop.f32.mrf.mxu0  ;;  %v311_v38 = vmax.f32 %v287_v31, 0.0  ;;  %v305_v53 = vmax.f32 %v272_v47, 0.0 }
  0xcb   :  { %v264_v63 = vadd.f32 %v263_v16, %v91_v60 }
  0xcf   :  { %v273_v0 = vpop.f32.mrf.mxu2  ;;  %v288_v1 = vpop.f32.mrf.mxu3 }
  0xd0   :  { %v289_v27 = vadd.f32 %v288_v1, %v141_v13  ;;  %v274_v48 = vadd.f32 %v273_v0, %v111_v40  ;;  %v302_v0 = vmax.f32 %v264_v63, 0.0 }
  0xd2   :  { %v266_v33 = vpop.f32.mrf.mxu0  ;;  %v312_v34 = vmax.f32 %v289_v27, 0.0  ;;  %v306_v55 = vmax.f32 %v274_v48, 0.0 }
  0xd3   :  { %v267_v56 = vadd.f32 %v266_v33, %v96_v45 }
  0xd4   :  { %v326_v44 = vpack.c.bf16 %v312_v34, %v311_v38  ;;  %v323_v62 = vpack.c.bf16 %v306_v55, %v305_v53 }
  0xd5   :  { %v303_v1 = vmax.f32 %v267_v56, 0.0 }
  0xd7   :  { %v276_v3 = vpop.f32.mrf.mxu2  ;;  %v291_v4 = vpop.f32.mrf.mxu3 }
  0xd8   :  { %v292_v23 = vadd.f32 %v291_v4, %v146_v5  ;;  %v277_v41 = vadd.f32 %v276_v3, %v116_v22  ;;  %v301_v3 = vmax.f32 %v262_v61, 0.0 }
  0xda   :  { %v313_v32 = vmax.f32 %v292_v23, 0.0  ;;  %v307_v49 = vmax.f32 %v277_v41, 0.0  ;;  %v268_v52 = vpop.f32.mrf.mxu0  ;;  %v321_v5 = vpack.c.bf16 %v302_v0, %v301_v3 }
  0xdb   :  { %v269_v57 = vadd.f32 %v268_v52, %v101_v54 }
  0xdf   :  { %v293_v8 = vpop.f32.mrf.mxu3  ;;  %v278_v9 = vpop.f32.mrf.mxu2 }
  0xe0   :  { %v294_v20 = vadd.f32 %v293_v8, %v151_v11  ;;  %v279_v42 = vadd.f32 %v278_v9, %v121_v26  ;;  %v388_v26 = vld [vmem:[%s708_s5] sm:$0x1] }
  0xe2   :  { %v314_v28 = vmax.f32 %v294_v20, 0.0  ;;  %v308_v50 = vmax.f32 %v279_v42, 0.0 }
  0xe4   :  { %v327_v36 = vpack.c.bf16 %v314_v28, %v313_v32  ;;  %v324_v58 = vpack.c.bf16 %v308_v50, %v307_v49 }
  0xe7   :  { %v296_v12 = vpop.f32.mrf.mxu3  ;;  %v281_v15 = vpop.f32.mrf.mxu2 }
  0xe8   :  { %v297_v17 = vadd.f32 %v296_v12, %v156_v2  ;;  %v282_v39 = vadd.f32 %v281_v15, %v126_v14  ;;  %v304_v2 = vmax.f32 %v269_v57, 0.0  ;;  %v351_v12 = vpop.permute.xlu2 %350  ;;  %v341_v14 = vpop.permute.xlu1 %340 }
  0xea   :  { %v315_v24 = vmax.f32 %v297_v17, 0.0  ;;  %v309_v46 = vmax.f32 %v282_v39, 0.0  ;;  %v322_v4 = vpack.c.bf16 %v304_v2, %v303_v1 }
  0xef   :  { %v298_v19 = vpop.f32.mrf.mxu3  ;;  %v283_v30 = vpop.f32.mrf.mxu2 }
  0xf0   :  { %v299_v21 = vadd.f32 %v298_v19, %v161_v7  ;;  %v284_v35 = vadd.f32 %v283_v30, %v131_v18  ;;  %v476_v7 = vld [vmem:[%s707_s3 + $0x8] sm:$0xff]  ;;  %v336_v18 = vpop.permute.xlu0 %335  ;;  %v395_v27 = vpop.permute.xlu2 %394 }
  0xf2   :  { %v316_v25 = vmax.f32 %v299_v21, 0.0  ;;  %v310_v43 = vmax.f32 %v284_v35, 0.0 }
  0xf4   :  { %v328_v29 = vpack.c.bf16 %v316_v25, %v315_v24  ;;  %v325_v51 = vpack.c.bf16 %v310_v43, %v309_v46 }
  0xf6   :  { %365 = vmatpush.bf16.msra.mxu1 %v328_v29 }
  0xfa   :  { %366 = vmatpush.bf16.msra.mxu1 %v327_v36 }
  0xfe   :  { %367 = vmatpush.bf16.msra.mxu1 %v326_v44 }
 0x102   :  { %368 = vmatpush.bf16.msra.mxu1 %v325_v51 }
 0x106   :  { %369 = vmatpush.bf16.msra.mxu1 %v324_v58 }
 0x10a   :  { %370 = vmatpush.bf16.msra.mxu1 %v323_v62 }
 0x10e   :  { %371 = vmatpush.bf16.msra.mxu1 %v322_v4 }
 0x112   :  { %372 = vmatpush.bf16.msra.mxu1 %v321_v5 }
 0x115   :  { %373 = vmatmul.bf16.vlgmr.msra.gmra.mxu1 %v475_v6 }
 0x125   :  { %378 = vmatmul.bf16.gmra.mxu1 %v476_v7 }
 0x192   :  { %v374_v8 = vpop.f32.mrf.mxu1 }
 0x193   :  { %v375_v19 = vadd.f32 %v374_v8, %v336_v18 }
 0x195   :  { %v384_v24 = vmax.f32 %v375_v19, 0.0 }
 0x19a   :  { %v376_v9 = vpop.f32.mrf.mxu1 }
 0x19b   :  { %v377_v16 = vadd.f32 %v376_v9, %v341_v14 }
 0x19d   :  { %v385_v22 = vmax.f32 %v377_v16, 0.0 }
 0x19f   :  { %v389_v25 = vpack.c.bf16 %v385_v22, %v384_v24 }
 0x1a2   :  { %v379_v11 = vpop.f32.mrf.mxu1 }
 0x1a3   :  { %v380_v13 = vadd.f32 %v379_v11, %v346_v10 }
 0x1a5   :  { %v386_v20 = vmax.f32 %v380_v13, 0.0 }
 0x1aa   :  { %v381_v15 = vpop.f32.mrf.mxu1 }
 0x1ab   :  { %v382_v17 = vadd.f32 %v381_v15, %v351_v12 }
 0x1ad   :  { %v387_v21 = vmax.f32 %v382_v17, 0.0 }
 0x1af   :  { %v390_v23 = vpack.c.bf16 %v387_v21, %v386_v20 }
 0x1b1   :  { %406 = vmatpush.bf16.msrb.mxu1 %v390_v23 }
 0x1b5   :  { %407 = vmatpush.bf16.msrb.mxu1 %v389_v25 }
 0x1b8   :  { %466 = vmatmul.msk.bf16.vlgmr.msrb.gmra.mxu1 %vm203_vm0, %v388_v26 }
 0x235   :  { %v409_v28 = vpop.f32.mrf.mxu1 }
 0x236   :  { %v410_v29 = vadd.f32 %v409_v28, %v395_v27 }
 0x238   :  { %413 = vst [vmem:[%s709_s7] sm:$0x3] %v410_v29 }
 0x23d   :  { %v411_v30 = vpop.f32.mrf.mxu1 }

</bundles_post_ra>
